<compile_context>
chip_gen: v7x
topology: tpu7x:2x2x1
jax: 0.10.0
libtpu: 0.0.40
codegen_flags: <defaults>
</compile_context>

<pallas_src>
import functools

import jax
import jax.numpy as jnp
from jax.experimental import pallas as pl
from jax.experimental.pallas import tpu as pltpu


# ---------------------------------------------------------------------------
# Fused multi-layer GCN kernel
# ---------------------------------------------------------------------------
def _gcn_fused_kernel(xw0_hbm, a_ref, w_ref, b_ref, o_ref, *scratch,
                      tm, num_applied, resident):
    """grid = (layer, row_tile); computes relu(A_hat @ XW_l + b_l) per layer.

    xw0_hbm : (N_pad, F_pad)     bf16  HBM (pl.ANY): host-precomputed X @ W0
    a_ref   : resident -> (N_pad, N_pad) bf16 HBM (pl.ANY), staged once to VMEM
              streaming -> (TM, N_pad)  bf16  pipelined A_hat row tile
    w_ref   : (1, F_pad, F_pad)  bf16  weight used to build the NEXT layer's XW
    b_ref   : (1, 1, F_pad)      f32   this layer's bias
    o_ref   : (TM, F_pad)        f32   output row tile (written on last layer only)
    scratch : resident -> (a_vmem, xw_a, xw_b, sem); else (xw_a, xw_b, sem)
    """
    if resident:
        a_vmem, xw_a, xw_b, sem = scratch
    else:
        xw_a, xw_b, sem = scratch

    layer = pl.program_id(0)   # outer, sequential
    tile = pl.program_id(1)    # inner row tile
    last = num_applied - 1

    # One-shot staging at the very first grid step: XW0 (and, when it fits,
    # the full normalized adjacency, which then stays resident across layers).
    @pl.when(jnp.logical_and(layer == 0, tile == 0))
    def _():
        cp_xw = pltpu.make_async_copy(xw0_hbm, xw_a, sem.at[0])
        cp_xw.start()
        if resident:
            cp_a = pltpu.make_async_copy(a_ref, a_vmem, sem.at[1])
            cp_a.start()
            cp_a.wait()
        cp_xw.wait()

    row0 = pl.multiple_of(tile * tm, tm)
    if resident:
        a_rows = a_vmem[pl.ds(row0, tm), :]
    else:
        a_rows = a_ref[...]

    def layer_step(xw_cur, xw_nxt):
        # Aggregation matmul (big MXU op) + f32 bias / ReLU epilogue.
        agg = jnp.dot(a_rows, xw_cur[...], preferred_element_type=jnp.float32)
        out = jnp.maximum(agg + b_ref[0], 0.0)

        # Distribute the next layer's XW across row tiles.  The ping-pong buffer
        # keeps the current layer's XW intact for the remaining tiles of this layer.
        @pl.when(layer < last)
        def _():
            xw_nxt[pl.ds(row0, tm), :] = jnp.dot(
                out.astype(xw_nxt.dtype), w_ref[0],
                preferred_element_type=jnp.float32).astype(xw_nxt.dtype)

        # Only the final layer stores its result (intermediate stores elided).
        @pl.when(layer == last)
        def _():
            o_ref[...] = out.astype(o_ref.dtype)

    # Static ping-pong selection via layer parity (both grid axes are sequential,
    # so this carry is race-free; do NOT mark either axis "parallel").
    @pl.when(layer % 2 == 0)
    def _():
        layer_step(xw_a, xw_b)

    @pl.when(layer % 2 == 1)
    def _():
        layer_step(xw_b, xw_a)


# ---------------------------------------------------------------------------
# Host-side glue
# ---------------------------------------------------------------------------
def _round_up(v, m):
    return (v + m - 1) // m * m


def _pad_to(a, shape):
    pads = [(0, s - d) for s, d in zip(shape, a.shape)]
    return jnp.pad(a, pads)


def _vmem_capacity_bytes():
    try:
        info = pltpu.get_tpu_info()
        cap = getattr(info, "vmem_capacity_bytes", None)
        if cap:
            return int(cap)
    except Exception:
        pass
    return 64 * 1024 * 1024   # conservative (v7x-sized) fallback


def _vmem_usage(n_pad, f_pad, tm, resident):
    b = 0
    if resident:
        b += n_pad * n_pad * 2            # A_hat resident (single VMEM buffer)
    else:
        b += 2 * tm * n_pad * 2           # A_hat row tile, double-buffered
    b += 2 * n_pad * f_pad * 2            # XW ping-pong (current / next layer)
    b += 2 * f_pad * f_pad * 2            # W_{l+1}, double-buffered
    b += 2 * f_pad * 4                    # bias, double-buffered
    b += 2 * tm * f_pad * 4               # output tile (f32), double-buffered
    b += 4 * tm * f_pad * 4               # slack for in-flight f32 temporaries
    return b


def _pick_tm(n_pad, f_pad, budget, resident):
    for tm in (1024, 512, 256, 128):
        if n_pad % tm != 0:
            continue
        if _vmem_usage(n_pad, f_pad, tm, resident) <= budget:
            return tm
    return None


def build_norm_adj(edge_index, edge_weight, num_nodes):
    """Dense symmetric-normalized adjacency with self loops (GCNConv norm)."""
    src = edge_index[0]
    dst = edge_index[1]
    loop = jnp.arange(num_nodes, dtype=edge_index.dtype)
    src = jnp.concatenate([src, loop])
    dst = jnp.concatenate([dst, loop])
    w = jnp.concatenate([edge_weight, jnp.ones((num_nodes,), edge_weight.dtype)])
    deg = jnp.zeros((num_nodes,), w.dtype).at[dst].add(w)
    dinv = jnp.where(deg > 0, 1.0 / jnp.sqrt(deg), 0.0)
    norm = dinv[src] * w * dinv[dst]
    adj = jnp.zeros((num_nodes, num_nodes), w.dtype).at[dst, src].add(norm)
    return adj


def gcn_fused_layers(adj, x, weights, biases):
    """Applies relu(A_hat @ (X @ W_i) + b_i) for every (W_i, b_i) in one pallas_call."""
    n = x.shape[0]
    num_applied = len(weights)
    out_dim = weights[-1].shape[1]

    # The kernel only ever sees post-layer-0 widths (X @ W0 is done on the host),
    # so pad features to the hidden width, not the (possibly huge) raw feature width.
    feat_dims = [w.shape[1] for w in weights] + [w.shape[0] for w in weights[1:]]
    f_pad = _round_up(max(feat_dims), 128)
    n_pad = _round_up(n, 128)

    cap = _vmem_capacity_bytes()
    budget = int(cap * 0.7)   # leave headroom for compiler-internal scratch

    resident = True
    tm = _pick_tm(n_pad, f_pad, budget, resident=True)
    if tm is None:
        resident = False
        tm = _pick_tm(n_pad, f_pad, budget, resident=False)
    if tm is None:
        # TODO(synk): K-tile the A_hat @ XW contraction (block-sparse A_hat) for
        # graphs whose dense row tiles / XW buffers exceed the VMEM budget.
        raise ValueError("graph too large for the dense fused GCN Pallas kernel")

    grid = (num_applied, n_pad // tm)

    adj_p = _pad_to(adj, (n_pad, n_pad)).astype(jnp.bfloat16)

    # Layer 0's X @ W0 is a single dense matmul; do it with plain XLA so the
    # kernel never holds the raw feature width.
    xw0 = jnp.dot(x.astype(jnp.bfloat16), weights[0].astype(jnp.bfloat16),
                  preferred_element_type=jnp.float32).astype(jnp.bfloat16)
    xw0_p = _pad_to(xw0, (n_pad, f_pad))

    # w_stack[l] is the weight used at layer l to build the NEXT layer's XW;
    # the final slot is a never-read placeholder (store is gated in-kernel).
    next_w = [_pad_to(w, (f_pad, f_pad)) for w in weights[1:]]
    next_w.append(jnp.zeros((f_pad, f_pad), weights[0].dtype))
    w_stack = jnp.stack(next_w).astype(jnp.bfloat16)
    b_stack = jnp.stack(
        [_pad_to(b.reshape(1, -1), (1, f_pad)) for b in biases]).astype(jnp.float32)

    if resident:
        a_spec = pl.BlockSpec(memory_space=pl.ANY)            # staged once into VMEM
        scratch = [pltpu.VMEM((n_pad, n_pad), jnp.bfloat16)]  # resident A_hat
    else:
        a_spec = pl.BlockSpec((tm, n_pad), lambda l, t: (t, 0))  # streamed row tiles
        scratch = []
    scratch += [
        pltpu.VMEM((n_pad, f_pad), jnp.bfloat16),   # XW ping-pong buffer A
        pltpu.VMEM((n_pad, f_pad), jnp.bfloat16),   # XW ping-pong buffer B
        pltpu.SemaphoreType.DMA((2,)),              # one-shot staging DMAs
    ]

    kernel = functools.partial(_gcn_fused_kernel, tm=tm,
                               num_applied=num_applied, resident=resident)
    out_p = pl.pallas_call(
        kernel,
        out_shape=jax.ShapeDtypeStruct((n_pad, f_pad), jnp.float32),
        grid_spec=pltpu.PrefetchScalarGridSpec(
            num_scalar_prefetch=0,
            grid=grid,
            in_specs=[
                pl.BlockSpec(memory_space=pl.ANY),                        # XW0 (HBM)
                a_spec,                                                   # A_hat
                pl.BlockSpec((1, f_pad, f_pad), lambda l, t: (l, 0, 0)),  # W_{l+1}
                pl.BlockSpec((1, 1, f_pad), lambda l, t: (l, 0, 0)),      # b_l
            ],
            out_specs=pl.BlockSpec((tm, f_pad), lambda l, t: (t, 0)),
            scratch_shapes=scratch,
        ),
        compiler_params=pltpu.CompilerParams(
            # Both axes carry state through VMEM scratch -> must stay sequential.
            dimension_semantics=("arbitrary", "arbitrary"),
            vmem_limit_bytes=budget),
    )(xw0_p, adj_p, w_stack, b_stack)

    return out_p[:n, :out_dim]


@jax.jit
def gcn_forward(x, edge_index, edge_weight, weights, biases):
    """GCN.forward in eval mode: only the first (num_layers - 1) convs are applied."""
    if len(weights) == 0:
        return x  # dropout (eval mode) is the identity
    adj = build_norm_adj(edge_index, edge_weight, x.shape[0])
    return gcn_fused_layers(adj, x, weights, biases)


def init_gcn_params(key, num_feats, num_layers, num_classes, dim_hidden):
    """Deterministic glorot-uniform weights + zero bias for every GCNConv."""
    dims = [num_feats] + [dim_hidden] * (num_layers - 1) + [num_classes]
    params = []
    for i in range(num_layers):
        key, wk = jax.random.split(key)
        fan_in, fan_out = dims[i], dims[i + 1]
        limit = jnp.sqrt(6.0 / (fan_in + fan_out))
        w = jax.random.uniform(wk, (fan_in, fan_out), jnp.float32, -limit, limit)
        b = jnp.zeros((fan_out,), jnp.float32)
        params.append((w, b))
    return params


def reference_forward(x, edge_index, edge_weight, weights, biases):
    """Pure-JAX reference with the same bf16-input / f32-accumulate precision."""
    adj = build_norm_adj(edge_index, edge_weight, x.shape[0]).astype(jnp.bfloat16)
    h = x.astype(jnp.bfloat16)
    out = x
    for w, b in zip(weights, biases):
        xw = jnp.dot(h, w.astype(jnp.bfloat16),
                     preferred_element_type=jnp.float32).astype(jnp.bfloat16)
        agg = jnp.dot(adj, xw, preferred_element_type=jnp.float32)
        out = jnp.maximum(agg + b.reshape(1, -1), 0.0)
        h = out.astype(jnp.bfloat16)
    return out


if __name__ == "__main__":
    N = 32            # number of graph nodes
    NUM_FEATS = 16
    DIM_HIDDEN = 32
    NUM_LAYERS = 3
    NUM_CLASSES = 8   # unused by forward() (last conv never called), kept for parity
    E = 96            # number of directed edges

    key = jax.random.PRNGKey(0)
    kx, ke, kp = jax.random.split(key, 3)

    x = jax.random.normal(kx, (N, NUM_FEATS), jnp.float32)
    edge_index = jax.random.randint(ke, (2, E), 0, N, jnp.int32)
    edge_weight = jnp.ones((E,), jnp.float32)

    params = init_gcn_params(kp, NUM_FEATS, NUM_LAYERS, NUM_CLASSES, DIM_HIDDEN)
    # forward() only ever calls the first (num_layers - 1) convolutions.
    weights = tuple(w for w, _ in params[:NUM_LAYERS - 1])
    biases = tuple(b for _, b in params[:NUM_LAYERS - 1])

    out = gcn_forward(x, edge_index, edge_weight, weights, biases)
    out = jax.block_until_ready(out)

    assert out.shape == (N, DIM_HIDDEN)
    assert bool(jnp.all(jnp.isfinite(out)))

    ref = reference_forward(x, edge_index, edge_weight, weights, biases)
    assert bool(jnp.allclose(out, ref, atol=2e-2, rtol=2e-2)), "mismatch vs reference"

    print("KERNEL_OK")
</pallas_src>

<mosaic_0001>
module attributes {stable_mosaic.version = 11 : i64} {
  func.func private @main(%arg0: i32) attributes {dimension_semantics = [#tpu.dimension_semantics<core_parallel>], iteration_bounds = array<i64: 2>, tpu.core_type = #tpu.core_type<sc_scalar_subcore>, window_params = []} {
    return
  }
}

module attributes {stable_mosaic.version = 11 : i64} {
  func.func private @main(%arg0: i32) attributes {dimension_semantics = [#tpu.dimension_semantics<core_parallel>], iteration_bounds = array<i64: 2>, tpu.core_type = #tpu.core_type<sc_scalar_subcore>, window_params = []} {
    return
  }
}

module attributes {stable_mosaic.version = 11 : i64} {
  func.func @_gcn_fused_kernel(%arg0: i32, %arg1: i32, %arg2: memref<128x128xbf16, #tpu.memory_space<any>>, %arg3: memref<128x128xbf16, #tpu.memory_space<any>>, %arg4: memref<1x128x128xbf16, #tpu.memory_space<vmem>>, %arg5: memref<1x1x128xf32, #tpu.memory_space<vmem>>, %arg6: memref<128x128xf32, #tpu.memory_space<vmem>>, %arg7: memref<128x128xbf16, #tpu.memory_space<vmem>>, %arg8: memref<128x128xbf16, #tpu.memory_space<vmem>>, %arg9: memref<128x128xbf16, #tpu.memory_space<vmem>>, %arg10: memref<2x!tpu.dma_semaphore, #tpu.memory_space<semaphore_mem>>) attributes {dimension_semantics = [#tpu.dimension_semantics<arbitrary>, #tpu.dimension_semantics<arbitrary>], iteration_bounds = array<i64: 2, 1>, scalar_prefetch = 0 : i64, scratch_operands = 4 : i64, tpu.core_type = #tpu.core_type<tc>, window_params = [{}, {}, {transform_indices = @transform_2, window_bounds = array<i64: 1, 128, 128>}, {transform_indices = @transform_3, window_bounds = array<i64: 1, 1, 128>}, {transform_indices = @transform_4, window_bounds = array<i64: 128, 128>}]} {
    %c0_i32 = arith.constant 0 : i32
    %0 = arith.cmpi eq, %arg0, %c0_i32 : i32
    %c0_i32_0 = arith.constant 0 : i32
    %1 = arith.cmpi eq, %arg1, %c0_i32_0 : i32
    %2 = arith.andi %0, %1 : i1
    %3 = arith.extui %2 : i1 to i32
    %c0_i32_1 = arith.constant 0 : i32
    %4 = arith.cmpi ne, %3, %c0_i32_1 : i32
    scf.if %4 {
      %c0_i32_16 = arith.constant 0 : i32
      %35 = tpu.memref_slice %arg10[%c0_i32_16] : memref<2x!tpu.dma_semaphore, #tpu.memory_space<semaphore_mem>> -> memref<1x!tpu.dma_semaphore, #tpu.memory_space<semaphore_mem>>
      %36 = tpu.memref_squeeze %35 : memref<1x!tpu.dma_semaphore, #tpu.memory_space<semaphore_mem>> -> memref<!tpu.dma_semaphore, #tpu.memory_space<semaphore_mem>>
      tpu.enqueue_dma source(%arg2 : memref<128x128xbf16, #tpu.memory_space<any>>) target(%arg8 : memref<128x128xbf16, #tpu.memory_space<vmem>>) target_semaphore(%36 : memref<!tpu.dma_semaphore, #tpu.memory_space<semaphore_mem>>)
      %c1_i32_17 = arith.constant 1 : i32
      %37 = tpu.memref_slice %arg10[%c1_i32_17] : memref<2x!tpu.dma_semaphore, #tpu.memory_space<semaphore_mem>> -> memref<1x!tpu.dma_semaphore, #tpu.memory_space<semaphore_mem>>
      %38 = tpu.memref_squeeze %37 : memref<1x!tpu.dma_semaphore, #tpu.memory_space<semaphore_mem>> -> memref<!tpu.dma_semaphore, #tpu.memory_space<semaphore_mem>>
      tpu.enqueue_dma source(%arg3 : memref<128x128xbf16, #tpu.memory_space<any>>) target(%arg7 : memref<128x128xbf16, #tpu.memory_space<vmem>>) target_semaphore(%38 : memref<!tpu.dma_semaphore, #tpu.memory_space<semaphore_mem>>)
      %c1_i32_18 = arith.constant 1 : i32
      %39 = tpu.memref_slice %arg10[%c1_i32_18] : memref<2x!tpu.dma_semaphore, #tpu.memory_space<semaphore_mem>> -> memref<1x!tpu.dma_semaphore, #tpu.memory_space<semaphore_mem>>
      %40 = tpu.memref_squeeze %39 : memref<1x!tpu.dma_semaphore, #tpu.memory_space<semaphore_mem>> -> memref<!tpu.dma_semaphore, #tpu.memory_space<semaphore_mem>>
      tpu.wait_dma2 semaphore(%40 : memref<!tpu.dma_semaphore, #tpu.memory_space<semaphore_mem>>) src(%arg3 : memref<128x128xbf16, #tpu.memory_space<any>>) dst(%arg7 : memref<128x128xbf16, #tpu.memory_space<vmem>>)
      %c0_i32_19 = arith.constant 0 : i32
      %41 = tpu.memref_slice %arg10[%c0_i32_19] : memref<2x!tpu.dma_semaphore, #tpu.memory_space<semaphore_mem>> -> memref<1x!tpu.dma_semaphore, #tpu.memory_space<semaphore_mem>>
      %42 = tpu.memref_squeeze %41 : memref<1x!tpu.dma_semaphore, #tpu.memory_space<semaphore_mem>> -> memref<!tpu.dma_semaphore, #tpu.memory_space<semaphore_mem>>
      tpu.wait_dma2 semaphore(%42 : memref<!tpu.dma_semaphore, #tpu.memory_space<semaphore_mem>>) src(%arg2 : memref<128x128xbf16, #tpu.memory_space<any>>) dst(%arg8 : memref<128x128xbf16, #tpu.memory_space<vmem>>)
    } else {
    }
    %c128_i32 = arith.constant 128 : i32
    %5 = arith.muli %arg1, %c128_i32 : i32
    %6 = tpu.assume_multiple %5, 128 : i32
    %7 = arith.index_cast %6 : i32 to index
    %c0 = arith.constant 0 : index
    %8 = vector.load %arg7[%7, %c0] : memref<128x128xbf16, #tpu.memory_space<vmem>>, vector<128x128xbf16>
    %c2_i32 = arith.constant 2 : i32
    %c0_i32_2 = arith.constant 0 : i32
    %9 = arith.cmpi eq, %c2_i32, %c0_i32_2 : i32
    %c1_i32 = arith.constant 1 : i32
    %10 = arith.select %9, %c1_i32, %c2_i32 : i32
    %11 = arith.remsi %arg0, %10 : i32
    %c0_i32_3 = arith.constant 0 : i32
    %12 = arith.cmpi ne, %11, %c0_i32_3 : i32
    %c0_i32_4 = arith.constant 0 : i32
    %13 = arith.cmpi slt, %11, %c0_i32_4 : i32
    %c0_i32_5 = arith.constant 0 : i32
    %14 = arith.cmpi slt, %10, %c0_i32_5 : i32
    %15 = arith.xori %13, %14 : i1
    %16 = arith.andi %15, %12 : i1
    %17 = arith.addi %11, %10 : i32
    %18 = arith.select %16, %17, %11 : i32
    %c0_i32_6 = arith.constant 0 : i32
    %19 = arith.cmpi eq, %18, %c0_i32_6 : i32
    %20 = arith.extui %19 : i1 to i32
    %c0_i32_7 = arith.constant 0 : i32
    %21 = arith.cmpi ne, %20, %c0_i32_7 : i32
    scf.if %21 {
      %c0_16 = arith.constant 0 : index
      %c0_17 = arith.constant 0 : index
      %35 = vector.load %arg8[%c0_16, %c0_17] : memref<128x128xbf16, #tpu.memory_space<vmem>>, vector<128x128xbf16>
      %cst = arith.constant dense<0.000000e+00> : vector<128x128xf32>
      %36 = tpu.matmul %8, %35, %cst {dimension_numbers = #tpu.dot_dimension_numbers<[1], [0], [0], [1], [0, 0, 1, 1], [], []>} : vector<128x128xbf16>, vector<128x128xbf16>, vector<128x128xf32> -> vector<128x128xf32>
      %c0_18 = arith.constant 0 : index
      %c0_19 = arith.constant 0 : index
      %c0_20 = arith.constant 0 : index
      %37 = vector.load %arg5[%c0_18, %c0_19, %c0_20] : memref<1x1x128xf32, #tpu.memory_space<vmem>>, vector<1x1x128xf32>
      %38 = vector.shape_cast %37 : vector<1x1x128xf32> to vector<1x128xf32>
      %39 = vector.broadcast %38 : vector<1x128xf32> to vector<128x128xf32>
      %40 = arith.addf %36, %39 : vector<128x128xf32>
      %cst_21 = arith.constant 0.000000e+00 : f32
      %41 = vector.broadcast %cst_21 : f32 to vector<128x128xf32>
      %42 = arith.maximumf %40, %41 : vector<128x128xf32>
      %c1_i32_22 = arith.constant 1 : i32
      %43 = arith.cmpi slt, %arg0, %c1_i32_22 : i32
      %44 = arith.extui %43 : i1 to i32
      %c0_i32_23 = arith.constant 0 : i32
      %45 = arith.cmpi ne, %44, %c0_i32_23 : i32
      scf.if %45 {
        %49 = arith.truncf %42 : vector<128x128xf32> to vector<128x128xbf16>
        %c0_26 = arith.constant 0 : index
        %c0_27 = arith.constant 0 : index
        %c0_28 = arith.constant 0 : index
        %50 = vector.load %arg4[%c0_26, %c0_27, %c0_28] : memref<1x128x128xbf16, #tpu.memory_space<vmem>>, vector<1x128x128xbf16>
        %51 = vector.shape_cast %50 : vector<1x128x128xbf16> to vector<128x128xbf16>
        %cst_29 = arith.constant dense<0.000000e+00> : vector<128x128xf32>
        %52 = tpu.matmul %49, %51, %cst_29 {dimension_numbers = #tpu.dot_dimension_numbers<[1], [0], [0], [1], [0, 0, 1, 1], [], []>} : vector<128x128xbf16>, vector<128x128xbf16>, vector<128x128xf32> -> vector<128x128xf32>
        %53 = arith.truncf %52 : vector<128x128xf32> to vector<128x128xbf16>
        %54 = arith.index_cast %6 : i32 to index
        %c0_30 = arith.constant 0 : index
        %55 = vector.load %arg9[%54, %c0_30] : memref<128x128xbf16, #tpu.memory_space<vmem>>, vector<128x128xbf16>
        tpu.vector_store %arg9[%54, %c0_30], %53 {strides = array<i32>} : memref<128x128xbf16, #tpu.memory_space<vmem>>, vector<128x128xbf16>,
      } else {
      }
      %c1_i32_24 = arith.constant 1 : i32
      %46 = arith.cmpi eq, %arg0, %c1_i32_24 : i32
      %47 = arith.extui %46 : i1 to i32
      %c0_i32_25 = arith.constant 0 : i32
      %48 = arith.cmpi ne, %47, %c0_i32_25 : i32
      scf.if %48 {
        %c0_26 = arith.constant 0 : index
        %c0_27 = arith.constant 0 : index
        %49 = vector.load %arg6[%c0_26, %c0_27] : memref<128x128xf32, #tpu.memory_space<vmem>>, vector<128x128xf32>
        tpu.vector_store %arg6[%c0_26, %c0_27], %42 {strides = array<i32>} : memref<128x128xf32, #tpu.memory_space<vmem>>, vector<128x128xf32>,
      } else {
      }
    } else {
    }
    %c2_i32_8 = arith.constant 2 : i32
    %c0_i32_9 = arith.constant 0 : i32
    %22 = arith.cmpi eq, %c2_i32_8, %c0_i32_9 : i32
    %c1_i32_10 = arith.constant 1 : i32
    %23 = arith.select %22, %c1_i32_10, %c2_i32_8 : i32
    %24 = arith.remsi %arg0, %23 : i32
    %c0_i32_11 = arith.constant 0 : i32
    %25 = arith.cmpi ne, %24, %c0_i32_11 : i32
    %c0_i32_12 = arith.constant 0 : i32
    %26 = arith.cmpi slt, %24, %c0_i32_12 : i32
    %c0_i32_13 = arith.constant 0 : i32
    %27 = arith.cmpi slt, %23, %c0_i32_13 : i32
    %28 = arith.xori %26, %27 : i1
    %29 = arith.andi %28, %25 : i1
    %30 = arith.addi %24, %23 : i32
    %31 = arith.select %29, %30, %24 : i32
    %c1_i32_14 = arith.constant 1 : i32
    %32 = arith.cmpi eq, %31, %c1_i32_14 : i32
    %33 = arith.extui %32 : i1 to i32
    %c0_i32_15 = arith.constant 0 : i32
    %34 = arith.cmpi ne, %33, %c0_i32_15 : i32
    scf.if %34 {
      %c0_16 = arith.constant 0 : index
      %c0_17 = arith.constant 0 : index
      %35 = vector.load %arg9[%c0_16, %c0_17] : memref<128x128xbf16, #tpu.memory_space<vmem>>, vector<128x128xbf16>
      %cst = arith.constant dense<0.000000e+00> : vector<128x128xf32>
      %36 = tpu.matmul %8, %35, %cst {dimension_numbers = #tpu.dot_dimension_numbers<[1], [0], [0], [1], [0, 0, 1, 1], [], []>} : vector<128x128xbf16>, vector<128x128xbf16>, vector<128x128xf32> -> vector<128x128xf32>
      %c0_18 = arith.constant 0 : index
      %c0_19 = arith.constant 0 : index
      %c0_20 = arith.constant 0 : index
      %37 = vector.load %arg5[%c0_18, %c0_19, %c0_20] : memref<1x1x128xf32, #tpu.memory_space<vmem>>, vector<1x1x128xf32>
      %38 = vector.shape_cast %37 : vector<1x1x128xf32> to vector<1x128xf32>
      %39 = vector.broadcast %38 : vector<1x128xf32> to vector<128x128xf32>
      %40 = arith.addf %36, %39 : vector<128x128xf32>
      %cst_21 = arith.constant 0.000000e+00 : f32
      %41 = vector.broadcast %cst_21 : f32 to vector<128x128xf32>
      %42 = arith.maximumf %40, %41 : vector<128x128xf32>
      %c1_i32_22 = arith.constant 1 : i32
      %43 = arith.cmpi slt, %arg0, %c1_i32_22 : i32
      %44 = arith.extui %43 : i1 to i32
      %c0_i32_23 = arith.constant 0 : i32
      %45 = arith.cmpi ne, %44, %c0_i32_23 : i32
      scf.if %45 {
        %49 = arith.truncf %42 : vector<128x128xf32> to vector<128x128xbf16>
        %c0_26 = arith.constant 0 : index
        %c0_27 = arith.constant 0 : index
        %c0_28 = arith.constant 0 : index
        %50 = vector.load %arg4[%c0_26, %c0_27, %c0_28] : memref<1x128x128xbf16, #tpu.memory_space<vmem>>, vector<1x128x128xbf16>
        %51 = vector.shape_cast %50 : vector<1x128x128xbf16> to vector<128x128xbf16>
        %cst_29 = arith.constant dense<0.000000e+00> : vector<128x128xf32>
        %52 = tpu.matmul %49, %51, %cst_29 {dimension_numbers = #tpu.dot_dimension_numbers<[1], [0], [0], [1], [0, 0, 1, 1], [], []>} : vector<128x128xbf16>, vector<128x128xbf16>, vector<128x128xf32> -> vector<128x128xf32>
        %53 = arith.truncf %52 : vector<128x128xf32> to vector<128x128xbf16>
        %54 = arith.index_cast %6 : i32 to index
        %c0_30 = arith.constant 0 : index
        %55 = vector.load %arg8[%54, %c0_30] : memref<128x128xbf16, #tpu.memory_space<vmem>>, vector<128x128xbf16>
        tpu.vector_store %arg8[%54, %c0_30], %53 {strides = array<i32>} : memref<128x128xbf16, #tpu.memory_space<vmem>>, vector<128x128xbf16>,
      } else {
      }
      %c1_i32_24 = arith.constant 1 : i32
      %46 = arith.cmpi eq, %arg0, %c1_i32_24 : i32
      %47 = arith.extui %46 : i1 to i32
      %c0_i32_25 = arith.constant 0 : i32
      %48 = arith.cmpi ne, %47, %c0_i32_25 : i32
      scf.if %48 {
        %c0_26 = arith.constant 0 : index
        %c0_27 = arith.constant 0 : index
        %49 = vector.load %arg6[%c0_26, %c0_27] : memref<128x128xf32, #tpu.memory_space<vmem>>, vector<128x128xf32>
        tpu.vector_store %arg6[%c0_26, %c0_27], %42 {strides = array<i32>} : memref<128x128xf32, #tpu.memory_space<vmem>>, vector<128x128xf32>,
      } else {
      }
    } else {
    }
    return
  }
  func.func @transform_2(%arg0: i32, %arg1: i32) -> (i32, i32, i32) {
    %c0_i32 = arith.constant 0 : i32
    %c0_i32_0 = arith.constant 0 : i32
    %c0_i32_1 = arith.constant 0 : i32
    return %arg0, %c0_i32, %c0_i32_0 : i32, i32, i32
  }
  func.func @transform_3(%arg0: i32, %arg1: i32) -> (i32, i32, i32) {
    %c0_i32 = arith.constant 0 : i32
    %c0_i32_0 = arith.constant 0 : i32
    %c0_i32_1 = arith.constant 0 : i32
    return %arg0, %c0_i32, %c0_i32_0 : i32, i32, i32
  }
  func.func @transform_4(%arg0: i32, %arg1: i32) -> (i32, i32) {
    %c0_i32 = arith.constant 0 : i32
    %c0_i32_0 = arith.constant 0 : i32
    return %arg1, %c0_i32 : i32, i32
  }
}

</mosaic_0001>

<bundles_post_ra>
// kernel: gcn_forward.1
= control target key start
LH: loop header
LB: loop body
LE: loop exit
PB: predicated region body
PF: predicated region fallthrough
CT: control target
= control target key end

     0   :  { %s1507_s15 = smov 0   ;;  %s1509_s16 = smov 0   ;;  %s1978_s0 = inlined_call_operand.vmem [shape: bf16[128,128], index: 0, kind: input, shape index: {}]   ;;  %s1979_s1 = inlined_call_operand.vmem [shape: bf16[128,128], index: 1, kind: input, shape index: {}]   ;;  %s1980_s2 = inlined_call_operand.vmem [shape: bf16[2,128,128], index: 2, kind: input, shape index: {}]   ;;  %s1981_s3 = inlined_call_operand.vmem [shape: f32[2,1,128], index: 3, kind: input, shape index: {}]   ;;  %s1982_s4 = inlined_call_operand.vmem [shape: f32[128,128], index: 4, kind: output, shape index: {}]  }
   0x1   :  { %s1511_s17 = smov 0  }
   0x2 LB: > { %s26_s18 = sadd.s32 1, %s1476_s16  ;;  %p1119_p0 = scmp.ge.s32.totalorder %s1480_s17, 1  ;;  %s1480_s17 = sphi %s1511_s17, %s14_s17   ;;  %s1476_s16 = sphi %s1509_s16, %s1984_s16   ;;  %s1472_s15 = sphi %s1507_s15, %s1983_s15  }
   0x3   : > { %p28_p1 = scmp.ge.s32.totalorder %s26_s18, 2  ;;  %p134_p2 = scmp.lt.s32.totalorder %s1480_s17, 3 }
   0x5   : > { %s1986_s18 = smov (%p28_p1, %s26_s18), 0  ;;  %p135_p3 = pnand %p1119_p0, %p134_p2 }
   0x6   : > { %p159_p4 = scmp.lt.s32.totalorder (!%p135_p3), %s1472_s15, 1  ;;  %p174_p5 = scmp.eq.s32.totalorder (!%p135_p3), %s1472_s15, 0 }
   0x7   : > { %138 = sbr.rel (%p135_p3) target bundleno = 1036 (0x40c), region = 28 }
   0xe   : > { %s160_s19 = scalar_select %p159_p4, %s1472_s15, 1 }
   0xf   : > { %179 = sbr.rel (!%p174_p5) target bundleno = 32 (0x20), region = 32  ;;  %v212_v0 = vld [vmem:[%s1978_s0] sm:$0xff] (%p174_p5)  ;;  %v214_v1 = vld [vmem:[%s1978_s0 + $0x8] sm:$0xff] (%p174_p5)  ;;  %v216_v2 = vld [vmem:[%s1978_s0 + $0x10] sm:$0xff] (%p174_p5) }
  0x10   : > { %s1156_s20 = sshll.u32 %s160_s19, 6  ;;  %s1533_s23 = scalar_lea.vmem %s1981_s3, %s160_s19  ;;  %213 = vst [vmem:[#allocation3] sm:$0xff] (%p174_p5), %v212_v0  ;;  %215 = vst [vmem:[#allocation3 + $0x8] sm:$0xff] (%p174_p5), %v214_v1  ;;  %v218_v3 = vld [vmem:[%s1978_s0 + $0x18] sm:$0xff] (%p174_p5)  ;;  %v220_v4 = vld [vmem:[%s1978_s0 + $0x20] sm:$0xff] (%p174_p5) }
  0x11   : > { %s1538_s26 = scalar_lea.vmem %s1980_s2, %s1156_s20  ;;  %217 = vst [vmem:[#allocation3 + $0x10] sm:$0xff] (%p174_p5), %v216_v2  ;;  %v222_v5 = vld [vmem:[%s1978_s0 + $0x28] sm:$0xff] (%p174_p5)  ;;  %219 = vst [vmem:[#allocation3 + $0x18] sm:$0xff] (%p174_p5), %v218_v3  ;;  %v224_v6 = vld [vmem:[%s1978_s0 + $0x30] sm:$0xff] (%p174_p5) }
  0x12   : > { %221 = vst [vmem:[#allocation3 + $0x20] sm:$0xff] (%p174_p5), %v220_v4  ;;  %223 = vst [vmem:[#allocation3 + $0x28] sm:$0xff] (%p174_p5), %v222_v5  ;;  %v226_v7 = vld [vmem:[%s1978_s0 + $0x38] sm:$0xff] (%p174_p5) }
  0x13   : > { %225 = vst [vmem:[#allocation3 + $0x30] sm:$0xff] (%p174_p5), %v224_v6  ;;  %227 = vst [vmem:[#allocation3 + $0x38] sm:$0xff] (%p174_p5), %v226_v7 }
  0x16   : > { %235 = vsyncadd [#allocation5], 1024  ;;  %v269_v8 = vld [vmem:[%s1979_s1] sm:$0xff]  ;;  %v271_v9 = vld [vmem:[%s1979_s1 + $0x8] sm:$0xff] }
  0x17   : > { %270 = vst [vmem:[#allocation2] sm:$0xff] %v269_v8  ;;  %272 = vst [vmem:[#allocation2 + $0x8] sm:$0xff] %v271_v9  ;;  %v273_v10 = vld [vmem:[%s1979_s1 + $0x10] sm:$0xff]  ;;  %v275_v11 = vld [vmem:[%s1979_s1 + $0x18] sm:$0xff] }
  0x18   : > { %v277_v12 = vld [vmem:[%s1979_s1 + $0x20] sm:$0xff]  ;;  %274 = vst [vmem:[#allocation2 + $0x10] sm:$0xff] %v273_v10  ;;  %276 = vst [vmem:[#allocation2 + $0x18] sm:$0xff] %v275_v11  ;;  %v279_v13 = vld [vmem:[%s1979_s1 + $0x28] sm:$0xff] }
  0x19   : > { %278 = vst [vmem:[#allocation2 + $0x20] sm:$0xff] %v277_v12  ;;  %v281_v14 = vld [vmem:[%s1979_s1 + $0x30] sm:$0xff]  ;;  %v283_v15 = vld [vmem:[%s1979_s1 + $0x38] sm:$0xff]  ;;  %280 = vst [vmem:[#allocation2 + $0x28] sm:$0xff] %v279_v13 }
  0x1a   : > { %282 = vst [vmem:[#allocation2 + $0x30] sm:$0xff] %v281_v14  ;;  %284 = vst [vmem:[#allocation2 + $0x38] sm:$0xff] %v283_v15 }
  0x1b   : > { %292 = vsyncadd [#allocation5 + $0x1], 1024 }
  0x1c   : > { %1466 = dma.done.wait [#allocation5 + $0x1], 1024 }
  0x1d   : > { %1467 = vsyncadd [#allocation5 + $0x1], 4294966272 }
  0x1e   : > { %1468 = dma.done.wait [#allocation5], 1024 }
  0x1f   : > { %1469 = vsyncadd [#allocation5], 4294966272 }
  0x20 PF: > { %v1588_v16 = vld [vmem:[#allocation2] sm:$0xff]  ;;  %v1590_v17 = vld [vmem:[#allocation2 + $0x8] sm:$0xff]  ;;  %v1592_v18 = vld [vmem:[#allocation2 + $0x10] sm:$0xff]  ;;  %p312_p6 = scmp.lt.s32.totalorder %s1472_s15, 0  ;;  %s313_s13 = ssub.s32 0, %s1472_s15 }
  0x21   : > { %v1596_v19 = vld [vmem:[#allocation2 + $0x18] sm:$0xff]  ;;  %v1598_v20 = vld [vmem:[#allocation2 + $0x20] sm:$0xff]  ;;  %v1600_v21 = vld [vmem:[#allocation2 + $0x28] sm:$0xff]  ;;  %s1123_s14 = smin.u32 %s1472_s15, %s313_s13 }
  0x22   : > { %v1603_v22 = vld [vmem:[#allocation2 + $0x30] sm:$0xff]  ;;  %v1605_v23 = vld [vmem:[#allocation2 + $0x38] sm:$0xff]  ;;  %s315_s19 = sand.u32 1, %s1123_s14  }
  0x23   : > { %s316_s20 = ssub.s32 0, %s315_s19 }
  0x24   : > { %s1988_s20 = smov (!%p312_p6, %s316_s20), %s315_s19 }
  0x25   : > { %p1125_p7 = scmp.lt.s32.totalorder %s1988_s20, 0  ;;  %s322_s21 = sadd.s32 2, %s1988_s20 }
  0x27   : > { %s1990_s21 = smov (!%p1125_p7, %s322_s21), %s1988_s20 }
  0x28   : > { %p1126_p8 = scmp.ne.s32.totalorder %s1990_s21, 0 }
  0x29   : > { %v328_v24 = vld [vmem:[#allocation3] sm:$0xff] (!%p1126_p8)  ;;  %v329_v25 = vld [vmem:[#allocation3 + $0x8] sm:$0xff] (!%p1126_p8)  ;;  %1238 = vmatprep.mubr.bf16.mxu0 (!%p1126_p8), %v1588_v16  ;;  %1246 = vmatprep.mubr.bf16.mxu1 (!%p1126_p8), %v1598_v20  ;;  %v330_v26 = vld [vmem:[#allocation3 + $0x10] sm:$0xff] (!%p1126_p8)  ;;  %p1128_p9 = scmp.ge.s32.totalorder (!%p1126_p8), %s1472_s15, 1 }
  0x2a   : > { %327 = sbr.rel (%p1126_p8) target bundleno = 545 (0x221), region = 104  ;;  %1222 = vmatprep.subr.bf16.mxu0 (!%p1126_p8), %v328_v24  ;;  %1350 = vmatprep.subr.bf16.mxu1 (!%p1126_p8), %v328_v24  ;;  %v331_v27 = vld [vmem:[#allocation3 + $0x18] sm:$0xff] (!%p1126_p8)  ;;  %v332_v28 = vld [vmem:[#allocation3 + $0x20] sm:$0xff] (!%p1126_p8)  ;;  %v333_v29 = vld [vmem:[#allocation3 + $0x28] sm:$0xff] (!%p1126_p8) }
  0x2b   : > { %1223 = vmatpush3.bf16.msra.mxu0 (!%p1126_p8), %v328_v24  ;;  %1358 = vmatpush3.bf16.msra.mxu1 (!%p1126_p8), %v328_v24  ;;  %v334_v30 = vld [vmem:[#allocation3 + $0x30] sm:$0xff] (!%p1126_p8)  ;;  %v335_v31 = vld [vmem:[#allocation3 + $0x38] sm:$0xff] (!%p1126_p8)  ;;  %v1127_v32 = vld [vmem:[%s1533_s23] ss:$0 sm:$0xff] (!%p1126_p8) }
  0x2c   : > { %1224 = vmatprep.subr.bf16.mxu0 (!%p1126_p8), %v329_v25  ;;  %1351 = vmatprep.subr.bf16.mxu1 (!%p1126_p8), %v329_v25 }
  0x2f   : > { %1225 = vmatpush3.bf16.msra.mxu0 (!%p1126_p8), %v329_v25  ;;  %1359 = vmatpush3.bf16.msra.mxu1 (!%p1126_p8), %v329_v25 }
  0x30   : > { %1226 = vmatprep.subr.bf16.mxu0 (!%p1126_p8), %v330_v26  ;;  %1352 = vmatprep.subr.bf16.mxu1 (!%p1126_p8), %v330_v26 }
  0x31   : > { %v1438_v25 = vld [vmem:[%s1538_s26] sm:$0xff] (!%p1128_p9)  }
  0x33   : > { %1227 = vmatpush3.bf16.msra.mxu0 %v330_v26  ;;  %1360 = vmatpush3.bf16.msra.mxu1 %v330_v26  ;;  %v1439_v26 = vld [vmem:[%s1538_s26 + $0x8] sm:$0xff] (!%p1128_p9)  }
  0x34   : > { %1228 = vmatprep.subr.bf16.mxu0 %v331_v27  ;;  %1353 = vmatprep.subr.bf16.mxu1 %v331_v27 }
  0x37   : > { %1229 = vmatpush3.bf16.msra.mxu0 %v331_v27  ;;  %1361 = vmatpush3.bf16.msra.mxu1 %v331_v27 }
  0x38   : > { %1230 = vmatprep.subr.bf16.mxu0 %v332_v28  ;;  %1354 = vmatprep.subr.bf16.mxu1 %v332_v28 }
  0x3b   : > { %1231 = vmatpush3.bf16.msra.mxu0 %v332_v28  ;;  %1362 = vmatpush3.bf16.msra.mxu1 %v332_v28 }
  0x3c   : > { %1232 = vmatprep.subr.bf16.mxu0 %v333_v29  ;;  %1355 = vmatprep.subr.bf16.mxu1 %v333_v29 }
  0x3f   : > { %1233 = vmatpush3.bf16.msra.mxu0 %v333_v29  ;;  %1363 = vmatpush3.bf16.msra.mxu1 %v333_v29  ;;  %v1440_v29 = vld [vmem:[%s1538_s26 + $0x10] sm:$0xff] (!%p1128_p9)  }
  0x40   : > { %1234 = vmatprep.subr.bf16.mxu0 %v334_v30  ;;  %1356 = vmatprep.subr.bf16.mxu1 %v334_v30 }
  0x43   : > { %1235 = vmatpush3.bf16.msra.mxu0 %v334_v30  ;;  %1364 = vmatpush3.bf16.msra.mxu1 %v334_v30  ;;  %v1441_v30 = vld [vmem:[%s1538_s26 + $0x18] sm:$0xff] (!%p1128_p9)  }
  0x44   : > { %1236 = vmatprep.subr.bf16.mxu0 %v335_v31  ;;  %1357 = vmatprep.subr.bf16.mxu1 %v335_v31 }
  0x47   : > { %1237 = vmatpush3.bf16.msra.mxu0 %v335_v31  ;;  %1365 = vmatpush3.bf16.msra.mxu1 %v335_v31  ;;  %v1442_v31 = vld [vmem:[%s1538_s26 + $0x20] sm:$0xff] (!%p1128_p9)  }
  0x48   : > { %1254 = vmatprep.subr.bf16.mxu0 (!%p1128_p9), %v1438_v25  ;;  %1366 = vmatprep.subr.bf16.mxu1 (!%p1128_p9), %v1438_v25 }
  0x4a   : > { %1239 = vmatmul.mubr.bf16.vlgmr.msra.gmra.mrb[0].mxu0 %v1590_v17  ;;  %1247 = vmatmul.mubr.bf16.vlgmr.msra.gmra.mrb[0].mxu1 %v1600_v21 }
  0x4b   : > { %1242 = vmatprep.mubr.bf16.mxu0 %v1592_v18  ;;  %1250 = vmatprep.mubr.bf16.mxu1 %v1603_v22 }
  0x4c   : > { %1255 = vmatpush3.bf16.msra.mxu0 (!%p1128_p9), %v1438_v25  ;;  %1374 = vmatpush3.bf16.msra.mxu1 (!%p1128_p9), %v1438_v25 }
  0x4d   : > { %1256 = vmatprep.subr.bf16.mxu0 (!%p1128_p9), %v1439_v26  ;;  %1367 = vmatprep.subr.bf16.mxu1 (!%p1128_p9), %v1439_v26 }
  0x50   : > { %1257 = vmatpush3.bf16.msra.mxu0 (!%p1128_p9), %v1439_v26  ;;  %1375 = vmatpush3.bf16.msra.mxu1 (!%p1128_p9), %v1439_v26 }
  0x51   : > { %1258 = vmatprep.subr.bf16.mxu0 (!%p1128_p9), %v1440_v29  ;;  %1368 = vmatprep.subr.bf16.mxu1 (!%p1128_p9), %v1440_v29 }
  0x52   : > { %1243 = vmatmul.mubr.bf16.gmra.mrb[4].mxu0 %v1596_v19  ;;  %1251 = vmatmul.mubr.bf16.gmra.mrb[4].mxu1 %v1605_v23 }
  0x54   : > { %1259 = vmatpush3.bf16.msra.mxu0 (!%p1128_p9), %v1440_v29  ;;  %1376 = vmatpush3.bf16.msra.mxu1 (!%p1128_p9), %v1440_v29 }
  0x55   : > { %1260 = vmatprep.subr.bf16.mxu0 (!%p1128_p9), %v1441_v30  ;;  %1369 = vmatprep.subr.bf16.mxu1 (!%p1128_p9), %v1441_v30 }
  0x58   : > { %1261 = vmatpush3.bf16.msra.mxu0 (!%p1128_p9), %v1441_v30  ;;  %1377 = vmatpush3.bf16.msra.mxu1 (!%p1128_p9), %v1441_v30 }
  0x59   : > { %1262 = vmatprep.subr.bf16.mxu0 (!%p1128_p9), %v1442_v31  ;;  %1370 = vmatprep.subr.bf16.mxu1 (!%p1128_p9), %v1442_v31 }
  0x5c   : > { %1263 = vmatpush3.bf16.msra.mxu0 (!%p1128_p9), %v1442_v31  ;;  %1378 = vmatpush3.bf16.msra.mxu1 (!%p1128_p9), %v1442_v31 }
 0x11d   : > { %v1240_v33 = vpop.f32.mrb[0].mxu0  ;;  %v1248_v34 = vpop.f32.mrb[0].mxu1 }
 0x11e   : > { %v1619_v35 = vadd.f32 %v1240_v33, %v1127_v32  ;;  %v1621_v36 = vadd.f32 %v1248_v34, %v1127_v32  ;;  %v377_v37 = vpop.f32.mrb[1].mxu0  ;;  %v409_v38 = vpop.f32.mrb[1].mxu1  ;;  %v1444_v33 = vld [vmem:[%s1538_s26 + $0x30] sm:$0xff] (!%p1128_p9)   ;;  %v1445_v34 = vld [vmem:[%s1538_s26 + $0x38] sm:$0xff] (!%p1128_p9)  }
 0x11f   : > { %v1623_v39 = vadd.f32 %v1127_v32, %v377_v37  ;;  %v1625_v40 = vadd.f32 %v1127_v32, %v409_v38  ;;  %v1241_v41 = vpop.f32.mrb[2].mxu0  ;;  %v1249_v42 = vpop.f32.mrb[2].mxu1 }
 0x120   : > { %v442_v43 = vmax.f32 %v1619_v35, 0.0  ;;  %v450_v44 = vmax.f32 %v1621_v36, 0.0  ;;  %v1629_v45 = vadd.f32 %v1241_v41, %v1127_v32  ;;  %v1631_v46 = vadd.f32 %v1249_v42, %v1127_v32  ;;  %v380_v47 = vpop.f32.mrb[3].mxu0  ;;  %v412_v48 = vpop.f32.mrb[3].mxu1 }
 0x121   : > { %v440_v49 = vmax.f32 %v1623_v39, 0.0  ;;  %v448_v50 = vmax.f32 %v1625_v40, 0.0  ;;  %v1635_v51 = vadd.f32 %v1127_v32, %v380_v47  ;;  %v1637_v52 = vadd.f32 %v1127_v32, %v412_v48 }
 0x122   : > { %v443_v53 = vmax.f32 %v1629_v45, 0.0  ;;  %v451_v54 = vmax.f32 %v1631_v46, 0.0 }
 0x123   : > { %v441_v55 = vmax.f32 %v1635_v51, 0.0  ;;  %v449_v56 = vmax.f32 %v1637_v52, 0.0 }
 0x124   : > { %v461_v37 = vpack.c.bf16 (!%p1128_p9), %v443_v53, %v442_v43  ;;  %v465_v38 = vpack.c.bf16 (!%p1128_p9), %v451_v54, %v450_v44 }
 0x125   : > { %v1244_v57 = vpop.f32.mrb[4].mxu0  ;;  %v1252_v58 = vpop.f32.mrb[4].mxu1  ;;  %459 = sbr.rel (%p1128_p9) target bundleno = 536 (0x218), region = 108  ;;  %v460_v27 = vpack.c.bf16 (!%p1128_p9), %v441_v55, %v440_v49  ;;  %v464_v28 = vpack.c.bf16 (!%p1128_p9), %v449_v56, %v448_v50 }
 0x126   : > { %v1643_v59 = vadd.f32 %v1244_v57, %v1127_v32  ;;  %v1645_v60 = vadd.f32 %v1252_v58, %v1127_v32  ;;  %v393_v61 = vpop.f32.mrb[5].mxu0  ;;  %v425_v62 = vpop.f32.mrb[5].mxu1 }
 0x127   : > { %v1647_v63 = vadd.f32 %v1127_v32, %v393_v61  ;;  %v1649_v0 = vadd.f32 %v1127_v32, %v425_v62  ;;  %v1245_v1 = vpop.f32.mrb[6].mxu0  ;;  %v1253_v2 = vpop.f32.mrb[6].mxu1  ;;  %1270 = vmatprep.mubr.bf16.mxu0 (!%p1128_p9), %v460_v27  ;;  %1278 = vmatprep.mubr.bf16.mxu1 (!%p1128_p9), %v464_v28 }
 0x128   : > { %v446_v3 = vmax.f32 %v1643_v59, 0.0  ;;  %v454_v4 = vmax.f32 %v1645_v60, 0.0  ;;  %v1653_v5 = vadd.f32 %v1245_v1, %v1127_v32  ;;  %v1655_v6 = vadd.f32 %v1253_v2, %v1127_v32  ;;  %v396_v7 = vpop.f32.mrb[7].mxu0  ;;  %v428_v8 = vpop.f32.mrb[7].mxu1 }
 0x129   : > { %v444_v9 = vmax.f32 %v1647_v63, 0.0  ;;  %v452_v10 = vmax.f32 %v1649_v0, 0.0  ;;  %v1659_v11 = vadd.f32 %v1127_v32, %v396_v7  ;;  %v1661_v12 = vadd.f32 %v1127_v32, %v428_v8  ;;  %v1443_v32 = vld [vmem:[%s1538_s26 + $0x28] sm:$0xff] (!%p1128_p9)  }
 0x12a   : > { %v447_v13 = vmax.f32 %v1653_v5, 0.0  ;;  %v455_v14 = vmax.f32 %v1655_v6, 0.0  ;;  %1264 = vmatprep.subr.bf16.mxu0 (!%p1128_p9), %v1443_v32  ;;  %1371 = vmatprep.subr.bf16.mxu1 (!%p1128_p9), %v1443_v32 }
 0x12b   : > { %v445_v15 = vmax.f32 %v1659_v11, 0.0  ;;  %v453_v24 = vmax.f32 %v1661_v12, 0.0  ;;  %1265 = vmatpush3.bf16.msra.mxu0 (!%p1128_p9), %v1443_v32  ;;  %1379 = vmatpush3.bf16.msra.mxu1 (!%p1128_p9), %v1443_v32 }
 0x12c   : > { %1266 = vmatprep.subr.bf16.mxu0 %v1444_v33  ;;  %1372 = vmatprep.subr.bf16.mxu1 %v1444_v33  ;;  %v463_v47 = vpack.c.bf16 %v447_v13, %v446_v3  ;;  %v467_v48 = vpack.c.bf16 %v455_v14, %v454_v4 }
 0x12d   : > { %v462_v41 = vpack.c.bf16 %v445_v15, %v444_v9  ;;  %v466_v42 = vpack.c.bf16 %v453_v24, %v452_v10 }
 0x12f   : > { %1267 = vmatpush3.bf16.msra.mxu0 %v1444_v33  ;;  %1380 = vmatpush3.bf16.msra.mxu1 %v1444_v33 }
 0x130   : > { %1268 = vmatprep.subr.bf16.mxu0 %v1445_v34  ;;  %1373 = vmatprep.subr.bf16.mxu1 %v1445_v34 }
 0x133   : > { %1269 = vmatpush3.bf16.msra.mxu0 %v1445_v34  ;;  %1381 = vmatpush3.bf16.msra.mxu1 %v1445_v34 }
 0x136   : > { %1271 = vmatmul.mubr.bf16.vlgmr.msra.gmra.mrb[0].mxu0 %v461_v37  ;;  %1279 = vmatmul.mubr.bf16.vlgmr.msra.gmra.mrb[0].mxu1 %v465_v38 }
 0x137   : > { %1274 = vmatprep.mubr.bf16.mxu0 %v462_v41  ;;  %1282 = vmatprep.mubr.bf16.mxu1 %v466_v42 }
 0x13e   : > { %1275 = vmatmul.mubr.bf16.gmra.mrb[4].mxu0 %v463_v47  ;;  %1283 = vmatmul.mubr.bf16.gmra.mrb[4].mxu1 %v467_v48 }
 0x209   : > { %v1272_v57 = vpop.f32.mrb[0].mxu0  ;;  %v1280_v58 = vpop.f32.mrb[0].mxu1 }
 0x20a   : > { %v566_v61 = vpop.f32.mrb[1].mxu0  ;;  %v598_v62 = vpop.f32.mrb[1].mxu1 }
 0x20b   : > { %v1273_v1 = vpop.f32.mrb[2].mxu0  ;;  %v1281_v2 = vpop.f32.mrb[2].mxu1 }
 0x20c   : > { %v630_v7 = vpack.c.bf16 %v1273_v1, %v1272_v57  ;;  %v634_v8 = vpack.c.bf16 %v1281_v2, %v1280_v58  ;;  %v569_v25 = vpop.f32.mrb[3].mxu0  ;;  %v601_v26 = vpop.f32.mrb[3].mxu1 }
 0x20d   : > { %v629_v27 = vpack.c.bf16 %v569_v25, %v566_v61  ;;  %v633_v28 = vpack.c.bf16 %v601_v26, %v598_v62 }
 0x20e   : > { %640 = vst [vmem:[#allocation4 + $0x8] sm:$0xff] %v630_v7  ;;  %644 = vst [vmem:[#allocation4 + $0x28] sm:$0xff] %v634_v8 }
 0x20f   : > { %639 = vst [vmem:[#allocation4] sm:$0xff] %v629_v27  ;;  %643 = vst [vmem:[#allocation4 + $0x20] sm:$0xff] %v633_v28 }
 0x211   : > { %v1276_v29 = vpop.f32.mrb[4].mxu0  ;;  %v1284_v30 = vpop.f32.mrb[4].mxu1 }
 0x212   : > { %v582_v31 = vpop.f32.mrb[5].mxu0  ;;  %v614_v32 = vpop.f32.mrb[5].mxu1 }
 0x213   : > { %v1277_v33 = vpop.f32.mrb[6].mxu0  ;;  %v1285_v34 = vpop.f32.mrb[6].mxu1 }
 0x214   : > { %v632_v37 = vpack.c.bf16 %v1277_v33, %v1276_v29  ;;  %v636_v38 = vpack.c.bf16 %v1285_v34, %v1284_v30  ;;  %v585_v41 = vpop.f32.mrb[7].mxu0  ;;  %v617_v42 = vpop.f32.mrb[7].mxu1 }
 0x215   : > { %v631_v47 = vpack.c.bf16 %v585_v41, %v582_v31  ;;  %v635_v48 = vpack.c.bf16 %v617_v42, %v614_v32 }
 0x216   : > { %642 = vst [vmem:[#allocation4 + $0x18] sm:$0xff] %v632_v37  ;;  %646 = vst [vmem:[#allocation4 + $0x38] sm:$0xff] %v636_v38 }
 0x217   : > { %641 = vst [vmem:[#allocation4 + $0x10] sm:$0xff] %v631_v47  ;;  %645 = vst [vmem:[#allocation4 + $0x30] sm:$0xff] %v635_v48 }
 0x218 PF: > { %p1137_p10 = scmp.ne.s32.totalorder %s1472_s15, 1 }
 0x219   : > { %651 = vst [vmem:[%s1982_s4] sm:$0xff] (!%p1137_p10), %v440_v49  ;;  %652 = vst [vmem:[%s1982_s4 + $0x8] sm:$0xff] (!%p1137_p10), %v441_v55 }
 0x21a   : > { %650 = sbr.rel (%p1137_p10) target bundleno = 545 (0x221), region = 112  ;;  %653 = vst [vmem:[%s1982_s4 + $0x10] sm:$0xff] (!%p1137_p10), %v442_v43  ;;  %654 = vst [vmem:[%s1982_s4 + $0x18] sm:$0xff] (!%p1137_p10), %v443_v53 }
 0x21b   : > { %655 = vst [vmem:[%s1982_s4 + $0x20] sm:$0xff] (!%p1137_p10), %v444_v9  ;;  %656 = vst [vmem:[%s1982_s4 + $0x28] sm:$0xff] (!%p1137_p10), %v445_v15 }
 0x21c   : > { %657 = vst [vmem:[%s1982_s4 + $0x30] sm:$0xff] (!%p1137_p10), %v446_v3  ;;  %658 = vst [vmem:[%s1982_s4 + $0x38] sm:$0xff] (!%p1137_p10), %v447_v13 }
 0x21d   : > { %659 = vst [vmem:[%s1982_s4 + $0x40] sm:$0xff] (!%p1137_p10), %v448_v50  ;;  %660 = vst [vmem:[%s1982_s4 + $0x48] sm:$0xff] (!%p1137_p10), %v449_v56 }
 0x21e   : > { %661 = vst [vmem:[%s1982_s4 + $0x50] sm:$0xff] (!%p1137_p10), %v450_v44  ;;  %662 = vst [vmem:[%s1982_s4 + $0x58] sm:$0xff] (!%p1137_p10), %v451_v54 }
 0x21f   : > { %663 = vst [vmem:[%s1982_s4 + $0x60] sm:$0xff] (!%p1137_p10), %v452_v10  ;;  %664 = vst [vmem:[%s1982_s4 + $0x68] sm:$0xff] (!%p1137_p10), %v453_v24 }
 0x220   : > { %665 = vst [vmem:[%s1982_s4 + $0x70] sm:$0xff] (!%p1137_p10), %v454_v4  ;;  %666 = vst [vmem:[%s1982_s4 + $0x78] sm:$0xff] (!%p1137_p10), %v455_v14 }
 0x221 PF: > { %p1138_p11 = scmp.ne.s32.totalorder %s1990_s21, 1 }
 0x222   : > { %v671_v35 = vld [vmem:[#allocation4] sm:$0xff] (!%p1138_p11)  ;;  %v672_v36 = vld [vmem:[#allocation4 + $0x8] sm:$0xff] (!%p1138_p11)  ;;  %1302 = vmatprep.mubr.bf16.mxu0 (!%p1138_p11), %v1588_v16  ;;  %1310 = vmatprep.mubr.bf16.mxu1 (!%p1138_p11), %v1598_v20  ;;  %v673_v39 = vld [vmem:[#allocation4 + $0x10] sm:$0xff] (!%p1138_p11)  ;;  %p1140_p12 = scmp.ge.s32.totalorder (!%p1138_p11), %s1472_s15, 1 }
 0x223   : > { %670 = sbr.rel (%p1138_p11) target bundleno = 1036 (0x40c), region = 116  ;;  %1286 = vmatprep.subr.bf16.mxu0 (!%p1138_p11), %v671_v35  ;;  %1382 = vmatprep.subr.bf16.mxu1 (!%p1138_p11), %v671_v35  ;;  %v674_v40 = vld [vmem:[#allocation4 + $0x18] sm:$0xff] (!%p1138_p11)  ;;  %v675_v43 = vld [vmem:[#allocation4 + $0x20] sm:$0xff] (!%p1138_p11)  ;;  %v676_v16 = vld [vmem:[#allocation4 + $0x28] sm:$0xff] (!%p1138_p11) }
 0x224   : > { %1287 = vmatpush3.bf16.msra.mxu0 (!%p1138_p11), %v671_v35  ;;  %1390 = vmatpush3.bf16.msra.mxu1 (!%p1138_p11), %v671_v35  ;;  %v677_v20 = vld [vmem:[#allocation4 + $0x30] sm:$0xff] (!%p1138_p11)  ;;  %v678_v44 = vld [vmem:[#allocation4 + $0x38] sm:$0xff] (!%p1138_p11)  ;;  %v1139_v45 = vld [vmem:[%s1533_s23] ss:$0 sm:$0xff] (!%p1138_p11) }
 0x225   : > { %1288 = vmatprep.subr.bf16.mxu0 (!%p1138_p11), %v672_v36  ;;  %1383 = vmatprep.subr.bf16.mxu1 (!%p1138_p11), %v672_v36 }
 0x228   : > { %1289 = vmatpush3.bf16.msra.mxu0 (!%p1138_p11), %v672_v36  ;;  %1391 = vmatpush3.bf16.msra.mxu1 (!%p1138_p11), %v672_v36 }
 0x229   : > { %1290 = vmatprep.subr.bf16.mxu0 (!%p1138_p11), %v673_v39  ;;  %1384 = vmatprep.subr.bf16.mxu1 (!%p1138_p11), %v673_v39 }
 0x22a   : > { %v1446_v34 = vld [vmem:[%s1538_s26] sm:$0xff] (!%p1140_p12)   ;;  %v1447_v37 = vld [vmem:[%s1538_s26 + $0x8] sm:$0xff] (!%p1140_p12)   ;;  %v1448_v42 = vld [vmem:[%s1538_s26 + $0x10] sm:$0xff] (!%p1140_p12)  }
 0x22b   : > { %v1449_v47 = vld [vmem:[%s1538_s26 + $0x18] sm:$0xff] (!%p1140_p12)   ;;  %v1450_v48 = vld [vmem:[%s1538_s26 + $0x20] sm:$0xff] (!%p1140_p12)   ;;  %v1451_v35 = vld [vmem:[%s1538_s26 + $0x28] sm:$0xff] (!%p1140_p12)  }
 0x22c   : > { %1291 = vmatpush3.bf16.msra.mxu0 %v673_v39  ;;  %1392 = vmatpush3.bf16.msra.mxu1 %v673_v39  ;;  %v1452_v36 = vld [vmem:[%s1538_s26 + $0x30] sm:$0xff] (!%p1140_p12)   ;;  %v1453_v39 = vld [vmem:[%s1538_s26 + $0x38] sm:$0xff] (!%p1140_p12)  }
 0x22d   : > { %1292 = vmatprep.subr.bf16.mxu0 %v674_v40  ;;  %1385 = vmatprep.subr.bf16.mxu1 %v674_v40 }
 0x230   : > { %1293 = vmatpush3.bf16.msra.mxu0 %v674_v40  ;;  %1393 = vmatpush3.bf16.msra.mxu1 %v674_v40 }
 0x231   : > { %1294 = vmatprep.subr.bf16.mxu0 %v675_v43  ;;  %1386 = vmatprep.subr.bf16.mxu1 %v675_v43 }
 0x234   : > { %1295 = vmatpush3.bf16.msra.mxu0 %v675_v43  ;;  %1394 = vmatpush3.bf16.msra.mxu1 %v675_v43 }
 0x235   : > { %1296 = vmatprep.subr.bf16.mxu0 %v676_v16  ;;  %1387 = vmatprep.subr.bf16.mxu1 %v676_v16 }
 0x238   : > { %1297 = vmatpush3.bf16.msra.mxu0 %v676_v16  ;;  %1395 = vmatpush3.bf16.msra.mxu1 %v676_v16 }
 0x239   : > { %1298 = vmatprep.subr.bf16.mxu0 %v677_v20  ;;  %1388 = vmatprep.subr.bf16.mxu1 %v677_v20 }
 0x23c   : > { %1299 = vmatpush3.bf16.msra.mxu0 %v677_v20  ;;  %1396 = vmatpush3.bf16.msra.mxu1 %v677_v20 }
 0x23d   : > { %1300 = vmatprep.subr.bf16.mxu0 %v678_v44  ;;  %1389 = vmatprep.subr.bf16.mxu1 %v678_v44 }
 0x240   : > { %1301 = vmatpush3.bf16.msra.mxu0 %v678_v44  ;;  %1397 = vmatpush3.bf16.msra.mxu1 %v678_v44 }
 0x241   : > { %1318 = vmatprep.subr.bf16.mxu0 (!%p1140_p12), %v1446_v34  ;;  %1398 = vmatprep.subr.bf16.mxu1 (!%p1140_p12), %v1446_v34 }
 0x243   : > { %1303 = vmatmul.mubr.bf16.vlgmr.msra.gmra.mrb[0].mxu0 %v1590_v17  ;;  %1311 = vmatmul.mubr.bf16.vlgmr.msra.gmra.mrb[0].mxu1 %v1600_v21 }
 0x244   : > { %1306 = vmatprep.mubr.bf16.mxu0 %v1592_v18  ;;  %1314 = vmatprep.mubr.bf16.mxu1 %v1603_v22 }
 0x245   : > { %1319 = vmatpush3.bf16.msra.mxu0 (!%p1140_p12), %v1446_v34  ;;  %1406 = vmatpush3.bf16.msra.mxu1 (!%p1140_p12), %v1446_v34 }
 0x246   : > { %1320 = vmatprep.subr.bf16.mxu0 (!%p1140_p12), %v1447_v37  ;;  %1399 = vmatprep.subr.bf16.mxu1 (!%p1140_p12), %v1447_v37 }
 0x249   : > { %1321 = vmatpush3.bf16.msra.mxu0 (!%p1140_p12), %v1447_v37  ;;  %1407 = vmatpush3.bf16.msra.mxu1 (!%p1140_p12), %v1447_v37 }
 0x24a   : > { %1322 = vmatprep.subr.bf16.mxu0 (!%p1140_p12), %v1448_v42  ;;  %1400 = vmatprep.subr.bf16.mxu1 (!%p1140_p12), %v1448_v42 }
 0x24b   : > { %1307 = vmatmul.mubr.bf16.gmra.mrb[4].mxu0 %v1596_v19  ;;  %1315 = vmatmul.mubr.bf16.gmra.mrb[4].mxu1 %v1605_v23 }
 0x24d   : > { %1323 = vmatpush3.bf16.msra.mxu0 (!%p1140_p12), %v1448_v42  ;;  %1408 = vmatpush3.bf16.msra.mxu1 (!%p1140_p12), %v1448_v42 }
 0x24e   : > { %1324 = vmatprep.subr.bf16.mxu0 (!%p1140_p12), %v1449_v47  ;;  %1401 = vmatprep.subr.bf16.mxu1 (!%p1140_p12), %v1449_v47 }
 0x251   : > { %1325 = vmatpush3.bf16.msra.mxu0 (!%p1140_p12), %v1449_v47  ;;  %1409 = vmatpush3.bf16.msra.mxu1 (!%p1140_p12), %v1449_v47 }
 0x252   : > { %1326 = vmatprep.subr.bf16.mxu0 (!%p1140_p12), %v1450_v48  ;;  %1402 = vmatprep.subr.bf16.mxu1 (!%p1140_p12), %v1450_v48 }
 0x255   : > { %1327 = vmatpush3.bf16.msra.mxu0 (!%p1140_p12), %v1450_v48  ;;  %1410 = vmatpush3.bf16.msra.mxu1 (!%p1140_p12), %v1450_v48 }
 0x256   : > { %1328 = vmatprep.subr.bf16.mxu0 (!%p1140_p12), %v1451_v35  ;;  %1403 = vmatprep.subr.bf16.mxu1 (!%p1140_p12), %v1451_v35 }
 0x259   : > { %1329 = vmatpush3.bf16.msra.mxu0 (!%p1140_p12), %v1451_v35  ;;  %1411 = vmatpush3.bf16.msra.mxu1 (!%p1140_p12), %v1451_v35 }
 0x25a   : > { %1330 = vmatprep.subr.bf16.mxu0 (!%p1140_p12), %v1452_v36  ;;  %1404 = vmatprep.subr.bf16.mxu1 (!%p1140_p12), %v1452_v36 }
 0x25d   : > { %1331 = vmatpush3.bf16.msra.mxu0 (!%p1140_p12), %v1452_v36  ;;  %1412 = vmatpush3.bf16.msra.mxu1 (!%p1140_p12), %v1452_v36 }
 0x25e   : > { %1332 = vmatprep.subr.bf16.mxu0 (!%p1140_p12), %v1453_v39  ;;  %1405 = vmatprep.subr.bf16.mxu1 (!%p1140_p12), %v1453_v39 }
 0x261   : > { %1333 = vmatpush3.bf16.msra.mxu0 (!%p1140_p12), %v1453_v39  ;;  %1413 = vmatpush3.bf16.msra.mxu1 (!%p1140_p12), %v1453_v39 }
 0x316   : > { %v1304_v46 = vpop.f32.mrb[0].mxu0  ;;  %v1312_v49 = vpop.f32.mrb[0].mxu1 }
 0x317   : > { %v1799_v50 = vadd.f32 %v1304_v46, %v1139_v45  ;;  %v1801_v51 = vadd.f32 %v1312_v49, %v1139_v45  ;;  %v720_v52 = vpop.f32.mrb[1].mxu0  ;;  %v752_v53 = vpop.f32.mrb[1].mxu1 }
 0x318   : > { %v1803_v17 = vadd.f32 %v1139_v45, %v720_v52  ;;  %v1805_v21 = vadd.f32 %v1139_v45, %v752_v53  ;;  %v1305_v18 = vpop.f32.mrb[2].mxu0  ;;  %v1313_v54 = vpop.f32.mrb[2].mxu1 }
 0x319   : > { %v785_v22 = vmax.f32 %v1799_v50, 0.0  ;;  %v793_v19 = vmax.f32 %v1801_v51, 0.0  ;;  %v1809_v23 = vadd.f32 %v1305_v18, %v1139_v45  ;;  %v1811_v55 = vadd.f32 %v1313_v54, %v1139_v45  ;;  %v723_v56 = vpop.f32.mrb[3].mxu0  ;;  %v755_v59 = vpop.f32.mrb[3].mxu1 }
 0x31a   : > { %v783_v60 = vmax.f32 %v1803_v17, 0.0  ;;  %v791_v63 = vmax.f32 %v1805_v21, 0.0  ;;  %v1815_v0 = vadd.f32 %v1139_v45, %v723_v56  ;;  %v1817_v3 = vadd.f32 %v1139_v45, %v755_v59 }
 0x31b   : > { %v786_v4 = vmax.f32 %v1809_v23, 0.0  ;;  %v794_v5 = vmax.f32 %v1811_v55, 0.0 }
 0x31c   : > { %v784_v6 = vmax.f32 %v1815_v0, 0.0  ;;  %v792_v9 = vmax.f32 %v1817_v3, 0.0 }
 0x31d   : > { %v804_v40 = vpack.c.bf16 (!%p1140_p12), %v786_v4, %v785_v22  ;;  %v808_v43 = vpack.c.bf16 (!%p1140_p12), %v794_v5, %v793_v19 }
 0x31e   : > { %v1308_v10 = vpop.f32.mrb[4].mxu0  ;;  %v1316_v11 = vpop.f32.mrb[4].mxu1  ;;  %802 = sbr.rel (%p1140_p12) target bundleno = 1027 (0x403), region = 120  ;;  %v803_v38 = vpack.c.bf16 (!%p1140_p12), %v784_v6, %v783_v60  ;;  %v807_v41 = vpack.c.bf16 (!%p1140_p12), %v792_v9, %v791_v63 }
 0x31f   : > { %v1823_v12 = vadd.f32 %v1308_v10, %v1139_v45  ;;  %v1825_v13 = vadd.f32 %v1316_v11, %v1139_v45  ;;  %v736_v14 = vpop.f32.mrb[5].mxu0  ;;  %v768_v15 = vpop.f32.mrb[5].mxu1 }
 0x320   : > { %v1827_v24 = vadd.f32 %v1139_v45, %v736_v14  ;;  %v1829_v57 = vadd.f32 %v1139_v45, %v768_v15  ;;  %v1309_v58 = vpop.f32.mrb[6].mxu0  ;;  %v1317_v61 = vpop.f32.mrb[6].mxu1  ;;  %1334 = vmatprep.mubr.bf16.mxu0 (!%p1140_p12), %v803_v38  ;;  %1342 = vmatprep.mubr.bf16.mxu1 (!%p1140_p12), %v807_v41 }
 0x321   : > { %v789_v62 = vmax.f32 %v1823_v12, 0.0  ;;  %v797_v1 = vmax.f32 %v1825_v13, 0.0  ;;  %v1833_v2 = vadd.f32 %v1309_v58, %v1139_v45  ;;  %v1835_v7 = vadd.f32 %v1317_v61, %v1139_v45  ;;  %v739_v8 = vpop.f32.mrb[7].mxu0  ;;  %v771_v25 = vpop.f32.mrb[7].mxu1  ;;  %1335 = vmatmul.mubr.bf16.vlgmr.msra.gmra.mrb[0].mxu0 (!%p1140_p12), %v804_v40  ;;  %1343 = vmatmul.mubr.bf16.vlgmr.msra.gmra.mrb[0].mxu1 (!%p1140_p12), %v808_v43 }
 0x322   : > { %v787_v26 = vmax.f32 %v1827_v24, 0.0  ;;  %v795_v27 = vmax.f32 %v1829_v57, 0.0  ;;  %v1839_v28 = vadd.f32 %v1139_v45, %v739_v8  ;;  %v1841_v29 = vadd.f32 %v1139_v45, %v771_v25 }
 0x323   : > { %v790_v30 = vmax.f32 %v1833_v2, 0.0  ;;  %v798_v31 = vmax.f32 %v1835_v7, 0.0 }
 0x324   : > { %v788_v32 = vmax.f32 %v1839_v28, 0.0  ;;  %v796_v33 = vmax.f32 %v1841_v29, 0.0 }
 0x325   : > { %v806_v44 = vpack.c.bf16 %v790_v30, %v789_v62  ;;  %v810_v45 = vpack.c.bf16 %v798_v31, %v797_v1 }
 0x326   : > { %v805_v16 = vpack.c.bf16 %v788_v32, %v787_v26  ;;  %v809_v20 = vpack.c.bf16 %v796_v33, %v795_v27 }
 0x328   : > { %1338 = vmatprep.mubr.bf16.mxu0 %v805_v16  ;;  %1346 = vmatprep.mubr.bf16.mxu1 %v809_v20 }
 0x329   : > { %1339 = vmatmul.mubr.bf16.gmra.mrb[4].mxu0 %v806_v44  ;;  %1347 = vmatmul.mubr.bf16.gmra.mrb[4].mxu1 %v810_v45 }
 0x3f4   : > { %v1336_v46 = vpop.f32.mrb[0].mxu0  ;;  %v1344_v49 = vpop.f32.mrb[0].mxu1 }
 0x3f5   : > { %v909_v52 = vpop.f32.mrb[1].mxu0  ;;  %v941_v53 = vpop.f32.mrb[1].mxu1 }
 0x3f6   : > { %v1337_v18 = vpop.f32.mrb[2].mxu0  ;;  %v1345_v54 = vpop.f32.mrb[2].mxu1 }
 0x3f7   : > { %v973_v56 = vpack.c.bf16 %v1337_v18, %v1336_v46  ;;  %v977_v59 = vpack.c.bf16 %v1345_v54, %v1344_v49  ;;  %v912_v10 = vpop.f32.mrb[3].mxu0  ;;  %v944_v11 = vpop.f32.mrb[3].mxu1 }
 0x3f8   : > { %v972_v14 = vpack.c.bf16 %v912_v10, %v909_v52  ;;  %v976_v15 = vpack.c.bf16 %v944_v11, %v941_v53 }
 0x3f9   : > { %983 = vst [vmem:[#allocation3 + $0x8] sm:$0xff] %v973_v56  ;;  %987 = vst [vmem:[#allocation3 + $0x28] sm:$0xff] %v977_v59 }
 0x3fa   : > { %982 = vst [vmem:[#allocation3] sm:$0xff] %v972_v14  ;;  %986 = vst [vmem:[#allocation3 + $0x20] sm:$0xff] %v976_v15 }
 0x3fc   : > { %v1340_v58 = vpop.f32.mrb[4].mxu0  ;;  %v1348_v61 = vpop.f32.mrb[4].mxu1 }
 0x3fd   : > { %v925_v8 = vpop.f32.mrb[5].mxu0  ;;  %v957_v25 = vpop.f32.mrb[5].mxu1 }
 0x3fe   : > { %v1341_v34 = vpop.f32.mrb[6].mxu0  ;;  %v1349_v37 = vpop.f32.mrb[6].mxu1 }
 0x3ff   : > { %v975_v38 = vpack.c.bf16 %v1341_v34, %v1340_v58  ;;  %v979_v41 = vpack.c.bf16 %v1349_v37, %v1348_v61  ;;  %v928_v42 = vpop.f32.mrb[7].mxu0  ;;  %v960_v47 = vpop.f32.mrb[7].mxu1 }
 0x400   : > { %v974_v48 = vpack.c.bf16 %v928_v42, %v925_v8  ;;  %v978_v35 = vpack.c.bf16 %v960_v47, %v957_v25 }
 0x401   : > { %985 = vst [vmem:[#allocation3 + $0x18] sm:$0xff] %v975_v38  ;;  %989 = vst [vmem:[#allocation3 + $0x38] sm:$0xff] %v979_v41 }
 0x402   : > { %984 = vst [vmem:[#allocation3 + $0x10] sm:$0xff] %v974_v48  ;;  %988 = vst [vmem:[#allocation3 + $0x30] sm:$0xff] %v978_v35 }
 0x403 PF: > { %p1149_p13 = scmp.ne.s32.totalorder %s1472_s15, 1 }
 0x404   : > { %994 = vst [vmem:[%s1982_s4] sm:$0xff] (!%p1149_p13), %v783_v60  ;;  %995 = vst [vmem:[%s1982_s4 + $0x8] sm:$0xff] (!%p1149_p13), %v784_v6 }
 0x405   : > { %993 = sbr.rel (%p1149_p13) target bundleno = 1036 (0x40c), region = 124  ;;  %996 = vst [vmem:[%s1982_s4 + $0x10] sm:$0xff] (!%p1149_p13), %v785_v22  ;;  %997 = vst [vmem:[%s1982_s4 + $0x18] sm:$0xff] (!%p1149_p13), %v786_v4 }
 0x406   : > { %998 = vst [vmem:[%s1982_s4 + $0x20] sm:$0xff] (!%p1149_p13), %v787_v26  ;;  %999 = vst [vmem:[%s1982_s4 + $0x28] sm:$0xff] (!%p1149_p13), %v788_v32 }
 0x407   : > { %1000 = vst [vmem:[%s1982_s4 + $0x30] sm:$0xff] (!%p1149_p13), %v789_v62  ;;  %1001 = vst [vmem:[%s1982_s4 + $0x38] sm:$0xff] (!%p1149_p13), %v790_v30 }
 0x408   : > { %1002 = vst [vmem:[%s1982_s4 + $0x40] sm:$0xff] (!%p1149_p13), %v791_v63  ;;  %1003 = vst [vmem:[%s1982_s4 + $0x48] sm:$0xff] (!%p1149_p13), %v792_v9 }
 0x409   : > { %1004 = vst [vmem:[%s1982_s4 + $0x50] sm:$0xff] (!%p1149_p13), %v793_v19  ;;  %1005 = vst [vmem:[%s1982_s4 + $0x58] sm:$0xff] (!%p1149_p13), %v794_v5 }
 0x40a   : > { %1006 = vst [vmem:[%s1982_s4 + $0x60] sm:$0xff] (!%p1149_p13), %v795_v27  ;;  %1007 = vst [vmem:[%s1982_s4 + $0x68] sm:$0xff] (!%p1149_p13), %v796_v33 }
 0x40b   : > { %1008 = vst [vmem:[%s1982_s4 + $0x70] sm:$0xff] (!%p1149_p13), %v797_v1  ;;  %1009 = vst [vmem:[%s1982_s4 + $0x78] sm:$0xff] (!%p1149_p13), %v798_v31 }
 0x40c PF: > { %s14_s17 = sadd.s32 1, %s1480_s17   ;;  %s1983_s15 = smov %s1476_s16 }
 0x40d   : > { %p11_p0 = scmp.ge.s32.totalorder %s14_s17, 4   ;;  %s1984_s16 = smov %s1986_s18 }
 0x40f   :  { %13 = sbr.rel (!%p11_p0) target bundleno = 2 (0x2), region = 178 }
 0x416   :  { %1032 = vsyncmov [#allocation5] }
 0x419   :  { %s1033_s20 = vpop.sfrf %1032 }
 0x41a   :  { %p1154_p1 = scmp.ne.s32.totalorder %s1033_s20, 0 }
 0x41c   :  { %1037 = shalt.err (%p1154_p1)  }
 0x41d   :  { %1039 = vsyncmov [#allocation5 + $0x1] }
 0x420   :  { %s1040_s22 = vpop.sfrf %1039 }
 0x421   :  { %p1155_p2 = scmp.ne.s32.totalorder %s1040_s22, 0 }
 0x423   :  { %1044 = shalt.err (%p1155_p2)  }

</bundles_post_ra>
